<compile_context>
chip_gen: v7x
topology: tpu7x:2x2x1
jax: 0.10.0
libtpu: 0.0.40
codegen_flags: <defaults>
</compile_context>

<pallas_src>
import functools

import jax
import jax.numpy as jnp
from jax.experimental import pallas as pl
from jax.experimental.pallas import tpu as pltpu


def depth_ffn_kernel(feat_ref, logit_ref, w_ref, b_ref, tile_ref, rep_ref, out_ref,
                     *, d_bins, group, mul_dtype, use_rep_matmul):
    feat = feat_ref[0]                                 # (C_in, TP), native dtype
    logits = logit_ref[0].astype(jnp.float32)          # (D+1, TP), f32 for stable softmax
    w = w_ref[...]                                     # (C_out, C_in), BN scale folded in
    b = b_ref[...]                                     # (C_out, 1) f32, BN shift folded in

    # channel_reduce: 1x1 conv == channel matmul on the MXU (f32 accumulate) + affine + ReLU.
    red = jnp.dot(w, feat, preferred_element_type=jnp.float32) + b
    red = jnp.maximum(red, 0.0)                        # (C_out, TP) f32

    # create_frustum_features: softmax over all D+1 bins, drop the last "out of range"
    # bin. The 1/sum is folded into the (smaller) feature matrix; divide goes to the EUP.
    m = jnp.max(logits, axis=0, keepdims=True)         # (1, TP)
    e = jnp.exp(logits - m)                            # (D+1, TP)
    s = jnp.sum(e, axis=0, keepdims=True)              # (1, TP)
    inv = pl.reciprocal(s, approx=True)                # (1, TP), EUP slot
    e_d = e[:d_bins]                                   # (D, TP): slice BEFORE scaling
    red = red * inv                                    # (C_out, TP)

    # Cast once for the dominant (C_out*D, TP) product (bf16 on v6e/v7x, f32 on v5e).
    e_d_m = e_d.astype(mul_dtype)
    red_m = red.astype(mul_dtype)
    c_out = red_m.shape[0]

    if use_rep_matmul:
        # D is not a sublane multiple: expand channel groups into (group*D, TP) slabs via
        # tiny 0/1 tile/repeat matmuls (exact, MXU) so every store is aligned & unmasked.
        gd = group * d_bins
        e_rep = jnp.dot(tile_ref[...], e_d_m)          # (gd, TP): e_d tiled `group` times
        for g in range(c_out // group):
            r_rep = jnp.dot(rep_ref[...], red_m[g * group:(g + 1) * group])  # (gd, TP)
            out_ref[0, g * gd:(g + 1) * gd] = (e_rep * r_rep).astype(out_ref.dtype)
    else:
        # D is a sublane multiple: direct per-channel broadcast multiply; each (D, TP)
        # slab lands sublane-aligned in the flattened, dense output block.
        for c in range(c_out):
            out_ref[0, c * d_bins:(c + 1) * d_bins] = (
                e_d_m * red_m[c:c + 1]).astype(out_ref.dtype)


def _tpu_vmem_and_bf16():
    """Physical VMEM bytes and whether the VPU has native bf16 (v6e and later)."""
    kind = ""
    try:
        kind = jax.devices()[0].device_kind.lower()
    except Exception:
        pass
    vmem = None
    try:
        vmem = int(pltpu.get_tpu_info().vmem_capacity_bytes)
    except Exception:
        vmem = None
    if vmem is None or vmem <= 0:
        if any(t in kind for t in ("v5e", "v5 lite", "v5lite", "v6")):
            vmem = 128 << 20
        else:
            vmem = 64 << 20                      # conservative (v7x: 64 MiB per TC)
    vmem = int(min(max(vmem, 32 << 20), 128 << 20))
    has_bf16_valu = not any(t in kind for t in ("v2", "v3", "v4", "v5"))
    return vmem, has_bf16_valu


def _select_spatial_tile(p, per_col_bytes, vmem_cap):
    """Largest multiple of 128 whose double-buffered per-step blocks fit the budget."""
    budget = int(vmem_cap * 0.55)
    target = 2048 if vmem_cap >= (96 << 20) else 512    # big tiles on 128 MiB parts
    p128 = ((p + 127) // 128) * 128
    cap = min(target, p128)
    best, tp = 128, 128
    while tp <= cap:
        if per_col_bytes * tp <= budget:
            best = tp
        tp += 128
    return best


def depth_ffn_forward(image_features, depth_logits, conv_w,
                      bn_gamma, bn_beta, bn_mean, bn_var, eps=1e-5,
                      out_dtype=jnp.bfloat16):
    """image_features: (N, C_in, H, W); depth_logits: (N, D+1, H, W).
    Returns frustum_features: (N, C_out, D, H, W) in `out_dtype`."""
    N, C_in, H, W = image_features.shape
    Dp1 = depth_logits.shape[1]
    D = Dp1 - 1
    C_out = conv_w.shape[0]
    P = H * W

    feat_dtype = image_features.dtype
    out_dtype = jnp.dtype(out_dtype)
    out_it = out_dtype.itemsize
    feat_it = jnp.dtype(feat_dtype).itemsize
    logit_it = jnp.dtype(depth_logits.dtype).itemsize

    vmem_cap, has_bf16_valu = _tpu_vmem_and_bf16()
    # Multiply dtype for the dominant elementwise product: bf16 only where the VPU is
    # natively bf16 (v6e/v7x) AND the output is bf16; v5e stays f32 (HBM-write bound).
    mul_dtype = jnp.bfloat16 if (out_it == 2 and has_bf16_valu) else jnp.float32

    # Fold eval-mode BatchNorm (running stats) into the 1x1 conv (conv bias=False).
    inv_std = 1.0 / jnp.sqrt(bn_var.astype(jnp.float32) + eps)
    scale = bn_gamma.astype(jnp.float32) * inv_std
    w_eff = (conv_w[:, :, 0, 0].astype(jnp.float32) * scale[:, None]).astype(feat_dtype)
    b_eff = (bn_beta.astype(jnp.float32) - bn_mean.astype(jnp.float32) * scale)[:, None]

    # Store grouping: pick group so each stored slab row-count is a sublane multiple of
    # the output tiling (8 rows for f32, 16 for bf16).
    sub = 16 if out_it == 2 else 8
    if D % sub == 0:
        group, use_rep_matmul = 1, False
    else:
        group = None
        for g in range(1, C_out + 1):
            if C_out % g == 0 and (g * D) % sub == 0:
                group = g
                break
        if group is None:
            group = C_out          # one slab per tile; tail store may be masked
        use_rep_matmul = True
    gd = group * D
    tile_mat = jnp.tile(jnp.eye(D, dtype=mul_dtype), (group, 1))       # (gd, D)
    rep_mat = jnp.repeat(jnp.eye(group, dtype=mul_dtype), D, axis=0)   # (gd, group)

    # Generation-aware spatial tile (inputs + output, double-buffered by the pipeline).
    per_col_bytes = 2 * (C_in * feat_it + Dp1 * logit_it) + 2 * C_out * D * out_it
    TP = _select_spatial_tile(P, per_col_bytes, vmem_cap)
    P_pad = ((P + TP - 1) // TP) * TP
    n_p_tiles = P_pad // TP

    feat = image_features.reshape(N, C_in, P)
    logits = depth_logits.reshape(N, Dp1, P)
    if P_pad != P:
        pad = P_pad - P
        feat = jnp.pad(feat, ((0, 0), (0, 0), (0, pad)))
        logits = jnp.pad(logits, ((0, 0), (0, 0), (0, pad)))

    # Scoped-VMEM request: per-step bytes already include the 2x double-buffer factor.
    const_bytes = (w_eff.size * feat_it + b_eff.size * 4
                   + (tile_mat.size + rep_mat.size) * jnp.dtype(mul_dtype).itemsize)
    vmem_limit = per_col_bytes * TP + const_bytes + (4 << 20)
    vmem_limit = int(min(max(vmem_limit, 32 << 20), max(vmem_cap - (8 << 20), 32 << 20)))

    cost = pl.CostEstimate(
        flops=int(2 * N * C_out * C_in * P + N * C_out * D * P + 6 * N * Dp1 * P),
        transcendentals=int(N * Dp1 * P),
        bytes_accessed=int(N * P * (C_in * feat_it + Dp1 * logit_it)
                           + N * C_out * D * P * out_it),
    )

    kernel = functools.partial(depth_ffn_kernel, d_bins=D, group=group,
                               mul_dtype=mul_dtype, use_rep_matmul=use_rep_matmul)

    out = pl.pallas_call(
        kernel,
        out_shape=jax.ShapeDtypeStruct((N, C_out * D, P_pad), out_dtype),
        grid_spec=pltpu.PrefetchScalarGridSpec(
            num_scalar_prefetch=0,
            grid=(N, n_p_tiles),
            in_specs=[
                pl.BlockSpec((1, C_in, TP), lambda n, p: (n, 0, p)),
                pl.BlockSpec((1, Dp1, TP), lambda n, p: (n, 0, p)),
                pl.BlockSpec((C_out, C_in), lambda n, p: (0, 0)),
                pl.BlockSpec((C_out, 1), lambda n, p: (0, 0)),
                pl.BlockSpec((gd, D), lambda n, p: (0, 0)),
                pl.BlockSpec((gd, group), lambda n, p: (0, 0)),
            ],
            out_specs=pl.BlockSpec((1, C_out * D, TP), lambda n, p: (n, 0, p)),
        ),
        compiler_params=pltpu.CompilerParams(
            dimension_semantics=("parallel", "parallel"),
            vmem_limit_bytes=vmem_limit),
        cost_estimate=cost,
    )(feat, logits, w_eff, b_eff, tile_mat, rep_mat)

    if P_pad != P:
        out = out[:, :, :P]
    return out.reshape(N, C_out, D, H, W)


def depth_ffn_reference(image_features, depth_logits, conv_w,
                        bn_gamma, bn_beta, bn_mean, bn_var, eps=1e-5):
    """Plain-JAX reference mirroring the PyTorch semantics (float32)."""
    inv_std = 1.0 / jnp.sqrt(bn_var + eps)
    scale = bn_gamma * inv_std
    w_eff = conv_w[:, :, 0, 0] * scale[:, None]
    b_eff = bn_beta - bn_mean * scale
    red = jnp.einsum('oi,nihw->nohw', w_eff, image_features.astype(jnp.float32))
    red = red + b_eff[None, :, None, None]
    red = jnp.maximum(red, 0.0)
    probs = jax.nn.softmax(depth_logits.astype(jnp.float32), axis=1)[:, :-1]
    return probs[:, None, :, :, :] * red[:, :, None, :, :]      # (N, C, D, H, W)


if __name__ == "__main__":
    key = jax.random.PRNGKey(0)
    N, C_in, C_out, H, W = 2, 8, 4, 16, 16
    num_bins = 4                      # D = num_bins, logits have D+1 channels

    k1, k2, k3, k4, k5, k6, k7 = jax.random.split(key, 7)
    # Stand-ins for the DDN backbone outputs (see TODO(synk) above).
    image_features = jax.random.normal(k1, (N, C_in, H, W), jnp.float32)
    depth_logits = jax.random.normal(k2, (N, num_bins + 1, H, W), jnp.float32)

    # BasicBlock2D parameters (1x1 conv, bias=False, BatchNorm2d), deterministic init.
    conv_w = 0.1 * jax.random.normal(k3, (C_out, C_in, 1, 1), jnp.float32)
    bn_gamma = 1.0 + 0.05 * jax.random.normal(k4, (C_out,), jnp.float32)
    bn_beta = 0.05 * jax.random.normal(k5, (C_out,), jnp.float32)
    bn_mean = 0.1 * jax.random.normal(k6, (C_out,), jnp.float32)
    bn_var = jnp.abs(jax.random.normal(k7, (C_out,), jnp.float32)) + 0.5

    ref = depth_ffn_reference(image_features, depth_logits, conv_w,
                              bn_gamma, bn_beta, bn_mean, bn_var)

    # Float32 in / float32 out: tight check (only approx-reciprocal deviation expected).
    out_f32 = depth_ffn_forward(image_features, depth_logits, conv_w,
                                bn_gamma, bn_beta, bn_mean, bn_var,
                                out_dtype=jnp.float32)
    out_f32 = jax.block_until_ready(out_f32)
    assert out_f32.shape == (N, C_out, num_bins, H, W)
    assert jnp.allclose(out_f32, ref, atol=1e-3, rtol=1e-2)

    # bf16 in / bf16 out: production setting (halves input reads and output writes).
    out_bf16 = depth_ffn_forward(image_features.astype(jnp.bfloat16),
                                 depth_logits.astype(jnp.bfloat16), conv_w,
                                 bn_gamma, bn_beta, bn_mean, bn_var,
                                 out_dtype=jnp.bfloat16)
    out_bf16 = jax.block_until_ready(out_bf16)
    assert out_bf16.shape == (N, C_out, num_bins, H, W)
    assert out_bf16.dtype == jnp.bfloat16
    assert jnp.allclose(out_bf16.astype(jnp.float32), ref, atol=4e-2, rtol=5e-2)

    print("KERNEL_OK")
</pallas_src>

<mosaic_0001>
module attributes {stable_mosaic.version = 11 : i64} {
  func.func @depth_ffn_kernel(%arg0: i32, %arg1: i32, %arg2: memref<1x8x256xf32, #tpu.memory_space<vmem>>, %arg3: memref<1x5x256xf32, #tpu.memory_space<vmem>>, %arg4: memref<4x8xf32, #tpu.memory_space<vmem>>, %arg5: memref<4x1xf32, #tpu.memory_space<vmem>>, %arg6: memref<8x4xf32, #tpu.memory_space<vmem>>, %arg7: memref<8x2xf32, #tpu.memory_space<vmem>>, %arg8: memref<1x16x256xf32, #tpu.memory_space<vmem>>) attributes {dimension_semantics = [#tpu.dimension_semantics<parallel>, #tpu.dimension_semantics<parallel>], iteration_bounds = array<i64: 2, 1>, scalar_prefetch = 0 : i64, scratch_operands = 0 : i64, tpu.core_type = #tpu.core_type<tc>, window_params = [{transform_indices = @transform_0, window_bounds = array<i64: 1, 8, 256>}, {transform_indices = @transform_1, window_bounds = array<i64: 1, 5, 256>}, {pipeline_mode = #tpu.pipeline_mode<synchronous>, transform_indices = @transform_2, window_bounds = array<i64: 4, 8>}, {pipeline_mode = #tpu.pipeline_mode<synchronous>, transform_indices = @transform_3, window_bounds = array<i64: 4, 1>}, {pipeline_mode = #tpu.pipeline_mode<synchronous>, transform_indices = @transform_4, window_bounds = array<i64: 8, 4>}, {pipeline_mode = #tpu.pipeline_mode<synchronous>, transform_indices = @transform_5, window_bounds = array<i64: 8, 2>}, {transform_indices = @transform_6, window_bounds = array<i64: 1, 16, 256>}]} {
    %c0 = arith.constant 0 : index
    %c0_0 = arith.constant 0 : index
    %c0_1 = arith.constant 0 : index
    %0 = vector.load %arg2[%c0, %c0_0, %c0_1] : memref<1x8x256xf32, #tpu.memory_space<vmem>>, vector<1x8x256xf32>
    %1 = vector.shape_cast %0 : vector<1x8x256xf32> to vector<8x256xf32>
    %c0_2 = arith.constant 0 : index
    %c0_3 = arith.constant 0 : index
    %c0_4 = arith.constant 0 : index
    %2 = vector.load %arg3[%c0_2, %c0_3, %c0_4] : memref<1x5x256xf32, #tpu.memory_space<vmem>>, vector<1x5x256xf32>
    %3 = vector.shape_cast %2 : vector<1x5x256xf32> to vector<5x256xf32>
    %c0_5 = arith.constant 0 : index
    %c0_6 = arith.constant 0 : index
    %4 = vector.load %arg4[%c0_5, %c0_6] : memref<4x8xf32, #tpu.memory_space<vmem>>, vector<4x8xf32>
    %c0_7 = arith.constant 0 : index
    %c0_8 = arith.constant 0 : index
    %5 = vector.load %arg5[%c0_7, %c0_8] : memref<4x1xf32, #tpu.memory_space<vmem>>, vector<4x1xf32>
    %cst = arith.constant dense<0.000000e+00> : vector<4x256xf32>
    %6 = tpu.matmul %4, %1, %cst {dimension_numbers = #tpu.dot_dimension_numbers<[1], [0], [0], [1], [0, 0, 1, 1], [], []>} : vector<4x8xf32>, vector<8x256xf32>, vector<4x256xf32> -> vector<4x256xf32>
    %7 = vector.broadcast %5 : vector<4x1xf32> to vector<4x256xf32>
    %8 = arith.addf %6, %7 : vector<4x256xf32>
    %cst_9 = arith.constant 0.000000e+00 : f32
    %9 = vector.broadcast %cst_9 : f32 to vector<4x256xf32>
    %10 = arith.maximumf %8, %9 : vector<4x256xf32>
    %cst_10 = arith.constant dense<0xFF800000> : vector<256xf32>
    %11 = vector.multi_reduction <maximumf>, %3, %cst_10 [0] : vector<5x256xf32> to vector<256xf32>
    %12 = vector.shape_cast %11 : vector<256xf32> to vector<1x256xf32>
    %13 = vector.broadcast %12 : vector<1x256xf32> to vector<5x256xf32>
    %14 = arith.subf %3, %13 : vector<5x256xf32>
    %15 = math.exp %14 : vector<5x256xf32>
    %cst_11 = arith.constant dense<0.000000e+00> : vector<256xf32>
    %16 = vector.multi_reduction <add>, %15, %cst_11 [0] : vector<5x256xf32> to vector<256xf32>
    %17 = vector.shape_cast %16 : vector<256xf32> to vector<1x256xf32>
    %18 = tpu.reciprocal %17 {approx = true} : vector<1x256xf32> -> vector<1x256xf32>
    %19 = vector.extract_strided_slice %15 {offsets = [0, 0], sizes = [4, 256], strides = [1, 1]} : vector<5x256xf32> to vector<4x256xf32>
    %20 = vector.broadcast %18 : vector<1x256xf32> to vector<4x256xf32>
    %21 = arith.mulf %10, %20 : vector<4x256xf32>
    %c0_12 = arith.constant 0 : index
    %c0_13 = arith.constant 0 : index
    %22 = vector.load %arg6[%c0_12, %c0_13] : memref<8x4xf32, #tpu.memory_space<vmem>>, vector<8x4xf32>
    %cst_14 = arith.constant dense<0.000000e+00> : vector<8x256xf32>
    %23 = tpu.matmul %22, %19, %cst_14 {dimension_numbers = #tpu.dot_dimension_numbers<[1], [0], [0], [1], [0, 0, 1, 1], [], []>} : vector<8x4xf32>, vector<4x256xf32>, vector<8x256xf32> -> vector<8x256xf32>
    %c0_15 = arith.constant 0 : index
    %c0_16 = arith.constant 0 : index
    %24 = vector.load %arg7[%c0_15, %c0_16] : memref<8x2xf32, #tpu.memory_space<vmem>>, vector<8x2xf32>
    %25 = vector.extract_strided_slice %21 {offsets = [0, 0], sizes = [2, 256], strides = [1, 1]} : vector<4x256xf32> to vector<2x256xf32>
    %cst_17 = arith.constant dense<0.000000e+00> : vector<8x256xf32>
    %26 = tpu.matmul %24, %25, %cst_17 {dimension_numbers = #tpu.dot_dimension_numbers<[1], [0], [0], [1], [0, 0, 1, 1], [], []>} : vector<8x2xf32>, vector<2x256xf32>, vector<8x256xf32> -> vector<8x256xf32>
    %27 = arith.mulf %23, %26 : vector<8x256xf32>
    %c0_18 = arith.constant 0 : index
    %c0_19 = arith.constant 0 : index
    %c0_20 = arith.constant 0 : index
    %28 = vector.load %arg8[%c0_18, %c0_19, %c0_20] : memref<1x16x256xf32, #tpu.memory_space<vmem>>, vector<1x8x256xf32>
    %29 = vector.shape_cast %28 : vector<1x8x256xf32> to vector<8x256xf32>
    %30 = vector.shape_cast %27 : vector<8x256xf32> to vector<1x8x256xf32>
    tpu.vector_store %arg8[%c0_18, %c0_19, %c0_20], %30 {strides = array<i32>} : memref<1x16x256xf32, #tpu.memory_space<vmem>>, vector<1x8x256xf32>,
    %c0_21 = arith.constant 0 : index
    %c0_22 = arith.constant 0 : index
    %31 = vector.load %arg7[%c0_21, %c0_22] : memref<8x2xf32, #tpu.memory_space<vmem>>, vector<8x2xf32>
    %32 = vector.extract_strided_slice %21 {offsets = [2, 0], sizes = [2, 256], strides = [1, 1]} : vector<4x256xf32> to vector<2x256xf32>
    %cst_23 = arith.constant dense<0.000000e+00> : vector<8x256xf32>
    %33 = tpu.matmul %31, %32, %cst_23 {dimension_numbers = #tpu.dot_dimension_numbers<[1], [0], [0], [1], [0, 0, 1, 1], [], []>} : vector<8x2xf32>, vector<2x256xf32>, vector<8x256xf32> -> vector<8x256xf32>
    %34 = arith.mulf %23, %33 : vector<8x256xf32>
    %c0_24 = arith.constant 0 : index
    %c8 = arith.constant 8 : index
    %c0_25 = arith.constant 0 : index
    %35 = vector.load %arg8[%c0_24, %c8, %c0_25] : memref<1x16x256xf32, #tpu.memory_space<vmem>>, vector<1x8x256xf32>
    %36 = vector.shape_cast %35 : vector<1x8x256xf32> to vector<8x256xf32>
    %37 = vector.shape_cast %34 : vector<8x256xf32> to vector<1x8x256xf32>
    tpu.vector_store %arg8[%c0_24, %c8, %c0_25], %37 {strides = array<i32>} : memref<1x16x256xf32, #tpu.memory_space<vmem>>, vector<1x8x256xf32>,
    return
  }
  func.func @transform_0(%arg0: i32, %arg1: i32) -> (i32, i32, i32) {
    %c0_i32 = arith.constant 0 : i32
    %c0_i32_0 = arith.constant 0 : i32
    return %arg0, %c0_i32, %arg1 : i32, i32, i32
  }
  func.func @transform_1(%arg0: i32, %arg1: i32) -> (i32, i32, i32) {
    %c0_i32 = arith.constant 0 : i32
    %c0_i32_0 = arith.constant 0 : i32
    return %arg0, %c0_i32, %arg1 : i32, i32, i32
  }
  func.func @transform_2(%arg0: i32, %arg1: i32) -> (i32, i32) {
    %c0_i32 = arith.constant 0 : i32
    %c0_i32_0 = arith.constant 0 : i32
    %c0_i32_1 = arith.constant 0 : i32
    return %c0_i32, %c0_i32_0 : i32, i32
  }
  func.func @transform_3(%arg0: i32, %arg1: i32) -> (i32, i32) {
    %c0_i32 = arith.constant 0 : i32
    %c0_i32_0 = arith.constant 0 : i32
    %c0_i32_1 = arith.constant 0 : i32
    return %c0_i32, %c0_i32_0 : i32, i32
  }
  func.func @transform_4(%arg0: i32, %arg1: i32) -> (i32, i32) {
    %c0_i32 = arith.constant 0 : i32
    %c0_i32_0 = arith.constant 0 : i32
    %c0_i32_1 = arith.constant 0 : i32
    return %c0_i32, %c0_i32_0 : i32, i32
  }
  func.func @transform_5(%arg0: i32, %arg1: i32) -> (i32, i32) {
    %c0_i32 = arith.constant 0 : i32
    %c0_i32_0 = arith.constant 0 : i32
    %c0_i32_1 = arith.constant 0 : i32
    return %c0_i32, %c0_i32_0 : i32, i32
  }
  func.func @transform_6(%arg0: i32, %arg1: i32) -> (i32, i32, i32) {
    %c0_i32 = arith.constant 0 : i32
    %c0_i32_0 = arith.constant 0 : i32
    return %arg0, %c0_i32, %arg1 : i32, i32, i32
  }
}

</mosaic_0001>

<bundles_post_ra>
// kernel: tpu_custom_call.1
= control target key start
LH: loop header
LB: loop body
LE: loop exit
PB: predicated region body
PF: predicated region fallthrough
CT: control target
= control target key end

     0   :  { %11 = vsyncpa [#allocation3], 0  ;;  %s1162_s0 = inlined_call_operand.vmem [shape: f32[2,8,256], index: 0, kind: input, shape index: {}]   ;;  %s1163_s1 = inlined_call_operand.vmem [shape: f32[2,5,256], index: 1, kind: input, shape index: {}]   ;;  %s1164_s2 = inlined_call_operand.vmem [shape: f32[4,8], index: 2, kind: input, shape index: {}]   ;;  %s1165_s3 = inlined_call_operand.vmem [shape: f32[4,1], index: 3, kind: input, shape index: {}]   ;;  %s1166_s4 = inlined_call_operand.vmem [shape: f32[8,4], index: 4, kind: input, shape index: {}]   ;;  %s1167_s5 = inlined_call_operand.vmem [shape: f32[8,2], index: 5, kind: input, shape index: {}]   ;;  %s1168_s6 = inlined_call_operand.hbm [shape: f32[2,16,256], index: 6, kind: output, shape index: {}]  }
   0x1   :  { %13 = vsyncpa [#allocation3 + $0x1], 0  ;;  %s1028_s21 = smov 0   ;;  %s1030_s22 = smov 0  }
   0x2   :  { %s1032_s23 = smov 0   ;;  %s1034_s24 = smov 0  }
   0x3   :  { %s1036_s25 = smov 0   ;;  %s1038_s26 = smov 0  }
   0x4 LB: > { %s812_s27 = sadd.s32 4294967295, %s986_s26   ;;  %s813_s28 = sadd.s32 4294967294, %s986_s26   ;;  %s986_s26 = sphi %s1038_s26, %s19_s26   ;;  %s982_s25 = sphi %s1036_s25, %s1175_s25   ;;  %s978_s24 = sphi %s1034_s24, %s1174_s24   ;;  %s974_s23 = sphi %s1032_s23, %s1173_s23   ;;  %s970_s22 = sphi %s1030_s22, %s1172_s22   ;;  %s966_s21 = sphi %s1028_s21, %s1171_s21  }
   0x5   : > { %s31_s29 = sadd.s32 1, %s982_s25  ;;  %s180_s30 = sadd.s32 1, %s974_s23 }
   0x6   : > { %p33_p0 = scmp.ge.s32.totalorder %s31_s29, 2  ;;  %p190_p1 = scmp.ne.s32.totalorder %s974_s23, %s970_s22 }
   0x7   : > { %p191_p2 = scmp.eq.s32.totalorder %s812_s27, 1  ;;  %p196_p3 = scmp.ne.s32.totalorder %s970_s22, %s966_s21 }
   0x8   : > { %s1177_s29 = smov (%p33_p0, %s31_s29), 0  ;;  %p197_p5 = scmp.eq.s32.totalorder %s813_s28, 1 }
   0x9   : > { %p1068_p4 = por %p191_p2, %p190_p1  ;;  %s175_s8 = ssub.s32 %s982_s25, %s1177_s29 }
   0xa   : > { %p816_p6 = scmp.ge.s32.totalorder %s986_s26, 1  ;;  %p178_p7 = scmp.eq.s32.totalorder %s175_s8, 0 }
   0xb   : > { %p1075_p8 = por %p197_p5, %p196_p3  ;;  %p253_p9 = scmp.lt.s32.totalorder %s986_s26, 3 }
   0xc   : > { %s1081_s10 = scalar_select %p178_p7, %s974_s23, %s180_s30  }
   0xd   : > { %p254_p10 = pnand %p816_p6, %p253_p9 }
   0xe   : > { %p297_p11 = scmp.lt.s32.totalorder (!%p254_p10), %s978_s24, 1  ;;  %v988_v0 = vmov (!%p254_p10), 0.0   ;;  %v322_v1 = vld [vmem:[%s1165_s3] sm:$0xf] (!%p254_p10)  ;;  %v989_v2 = vmov (!%p254_p10), 0   ;;  %vm405_vm0 = vcmask (!%p254_p10), 1044480  }
   0xf   : > { %257 = sbr.rel (%p254_p10) target bundleno = 482 (0x1e2), region = 44  ;;  %396 = vmatprep.mubr.f32.mxu0 (!%p254_p10), %v988_v0  ;;  %520 = vmatprep.mubr.f32.mxu1 (!%p254_p10), %v988_v0  ;;  %v321_v3 = vld [vmem:[%s1164_s2] sm:$0xf] (!%p254_p10)  ;;  %vm328_vm1 = vcmask (!%p254_p10), 64512   ;;  %vm449_vm2 = vcmask (!%p254_p10), 1043456   ;;  %vm445_vm3 = vcmask (!%p254_p10), 31744  }
  0x10   : > { %899 = vset.pattern.permute.xlu0 (!%p254_p10), %v989_v2  ;;  %v444_v30 = vld [vmem:[%s1166_s4] sm:$0xff] (!%p254_p10)  ;;  %vm532_vm4 = vcmask (!%p254_p10), 1041408   ;;  %vm528_vm5 = vcmask (!%p254_p10), 15360   ;;  %s990_s28 = smov (!%p254_p10), [#allocation2]  }
  0x11   : > { %325 = vperm.xlu0 (!%p254_p10), %899, %v322_v1   ;;  %v527_v54 = vld [vmem:[%s1167_s5] sm:$0xff] (!%p254_p10)  ;;  %s912_s30 = sshll.u32 (!%p254_p10), %s990_s28, 4  ;;  %s913_s30 = int_to_ptr.vmem [resolvable:$false] %s912_s30 }
  0x12   : > { %s914_s8 = scalar_lea.vmem (!%p254_p10), %s913_s30, 1024 }
  0x16   : > { %s298_s13 = scalar_select %p297_p11, %s978_s24, 1 }
  0x18   : > { %s837_s14 = sshll.u32 %s298_s13, 4  ;;  %s293_s13 = sand.u32 1, %s970_s22  }
  0x19   : > { %s304_s17 = scalar_lea.vmem %s1162_s0, %s837_s14  ;;  %s314_s20 = scalar_lea.vmem %s1163_s1, %s837_s14 }
  0x1a   : > { %v318_v4 = vld [vmem:[%s304_s17 + $0x8] sm:$0xff]  ;;  %v319_v5 = vld [vmem:[%s314_s20] sm:$0x1f]  ;;  %s817_s14 = sshll.u32 %s293_s13, 5 }
  0x1b   : > { %v320_v6 = vld [vmem:[%s314_s20 + $0x8] sm:$0x1f]  ;;  %332 = vmatprep.subr.mxu0 %v318_v4  ;;  %v406_v7 = vsel %vm405_vm0, %v319_v5, -inf  ;;  %v317_v9 = vld [vmem:[%s304_s17] sm:$0xff]  ;;  %s295_s15 = scalar_lea.vmem [#allocation2], %s817_s14  ;;  %s839_s17 = sshll.u32 %s978_s24, 9 }
  0x1c   : > { %v413_v8 = vsel %vm405_vm0, %v320_v6, -inf  ;;  %v407_v10 = vrot.slane %v406_v7, 4  ;;  %333 = vmatpush1.msra.mxu0 %v317_v9  ;;  %s715_s16 = sshll.u32 %s295_s15, 4  ;;  %s1114_s20 = scalar_lea.hbm %s1168_s6, %s839_s17  ;;  %s1109_s16 = int_to_ptr.vmem [resolvable:$true] %s715_s16 }
  0x1d   : > { %v414_v11 = vrot.slane %v413_v8, 4  ;;  %822 = vmatmul.mubr.msk.f32.vlgmr.msra.gmra.mrb[0].mxu0 %vm328_vm1, %v321_v3  ;;  %s1116_s24 = scalar_lea.sflag [#allocation3], %s293_s13  ;;  %s908_s27 = scalar_lea.vmem %s1109_s16, 512 }
  0x1e   : > { %v408_v12 = vmax.f32 %v406_v7, %v407_v10  ;;  %603 = vmatprep.mubr.f32.mxu0 %v988_v0  ;;  %p909_p12 = scmp.ne.s32.totalorder %s1109_s16, %s908_s27  ;;  %p915_p1 = scmp.lt.s32.totalorder %s1109_s16, %s913_s30 }
  0x1f   : > { %v415_v13 = vmax.f32 %v413_v8, %v414_v11  ;;  %p916_p2 = scmp.lt.s32.totalorder %s914_s8, %s908_s27 }
  0x20   : > { %v409_v14 = vrot.slane %v408_v12, 2  ;;  %p910_p13 = pnand %p909_p12, %p1068_p4 }
  0x21   : > { %v416_v15 = vrot.slane %v415_v13, 2  ;;  %p917_p3 = por %p916_p2, %p915_p1 }
  0x22   : > { %v410_v16 = vmax.f32 %v408_v12, %v409_v14  ;;  %p911_p0 = pneg %p910_p13 }
  0x23   : > { %v417_v17 = vmax.f32 %v415_v13, %v416_v15 }
  0x24   : > { %v411_v18 = vrot.slane %v410_v16, 1  ;;  %p918_p5 = pnand %p917_p3, %p911_p0 }
  0x25   : > { %v418_v19 = vrot.slane %v417_v17, 1 }
  0x26   : > { %v412_v20 = vmax.f32 %v410_v16, %v411_v18 }
  0x27   : > { %v419_v21 = vmax.f32 %v417_v17, %v418_v19 }
  0x28   : > { %v420_v22 = vsub.f32 %v319_v5, %v412_v20 }
  0x29   : > { %v421_v23 = vsub.f32 %v320_v6, %v419_v21 }
  0x2a   : > { %v422_v24 = vmul.f32 1.442695, %v420_v22 }
  0x2b   : > { %v424_v25 = vmul.f32 1.442695, %v421_v23 }
  0x2c   : > { %900 = vpow2.f32 %v422_v24 }
  0x2d   : > { %902 = vpow2.f32 %v424_v25 }
  0x36   : > { %v901_v26 = vpop.eup %900 }
  0x37   : > { %v903_v27 = vpop.eup %902  ;;  %v426_v28 = vsel %vm405_vm0, %v901_v26, 0.0 }
  0x38   : > { %v433_v29 = vsel %vm405_vm0, %v903_v27, 0.0  ;;  %823 = vmatprep.subr.msk.mxu1 %vm449_vm2, %v903_v27  ;;  %v427_v31 = vrot.slane %v426_v28, 4 }
  0x39   : > { %824 = vmatpush1.msk.msra.mxu1 %vm449_vm2, %v901_v26  ;;  %v434_v32 = vrot.slane %v433_v29, 4 }
  0x3a   : > { %825 = vmatmul.mubr.msk.f32.vlgmr.msra.gmra.mrb[0].mxu1 %vm445_vm3, %v444_v30  ;;  %v428_v33 = vadd.f32 %v427_v31, %v426_v28 }
  0x3b   : > { %688 = vmatprep.mubr.f32.mxu1 %v988_v0  ;;  %v435_v34 = vadd.f32 %v434_v32, %v433_v29 }
  0x3c   : > { %v429_v35 = vrot.slane %v428_v33, 2 }
  0x3d   : > { %v436_v36 = vrot.slane %v435_v34, 2 }
  0x3e   : > { %v430_v37 = vadd.f32 %v429_v35, %v428_v33 }
  0x3f   : > { %v437_v38 = vadd.f32 %v436_v36, %v435_v34 }
  0x40   : > { %v431_v39 = vrot.slane %v430_v37, 1 }
  0x41   : > { %v438_v40 = vrot.slane %v437_v38, 1 }
  0x42   : > { %v432_v41 = vadd.f32 %v431_v39, %v430_v37 }
  0x43   : > { %v439_v42 = vadd.f32 %v438_v40, %v437_v38 }
  0x44   : > { %904 = vrcp.f32 %v432_v41 }
  0x45   : > { %906 = vrcp.f32 %v439_v42 }
  0x4e   : > { %v905_v47 = vpop.eup %904 }
  0x4f   : > { %v907_v49 = vpop.eup %906 }
  0x90   : > { %v326_v43 = vpop.permute.xlu0 %325 }
  0xf0   : > { %v398_v44 = vpop.f32.mrb[0].mxu0 }
  0xf1   : > { %v399_v45 = vadd.f32 %v398_v44, %v326_v43  ;;  %v400_v46 = vpop.f32.mrb[1].mxu0 }
  0xf2   : > { %v401_v48 = vadd.f32 %v400_v46, %v326_v43 }
  0xf3   : > { %v403_v50 = vmax.f32 %v399_v45, 0.0 }
  0xf4   : > { %v404_v51 = vmax.f32 %v401_v48, 0.0 }
  0xf5   : > { %v442_v52 = vmul.f32 %v905_v47, %v403_v50 }
  0xf6   : > { %v443_v53 = vmul.f32 %v907_v49, %v404_v51 }
  0xf7   : > { %v615_v56 = vrot.slane %v442_v52, 2 }
  0xf8   : > { %v616_v55 = vrot.slane %v443_v53, 2  ;;  %826 = vmatprep.subr.msk.mxu0 %vm532_vm4, %v443_v53 }
  0xf9   : > { %827 = vmatpush1.msk.msra.mxu0 %vm532_vm4, %v442_v52 }
  0xfa   : > { %828 = vmatmul.mubr.msk.f32.vlgmr.msra.gmra.mrb[2].mxu0 %vm528_vm5, %v527_v54  ;;  %829 = vmatprep.subr.msk.mxu1 %vm532_vm4, %v616_v55 }
  0xfb   : > { %830 = vmatpush1.msk.msra.mxu1 %vm532_vm4, %v615_v56 }
  0xfc   : > { %831 = vmatmul.mubr.msk.f32.vlgmr.msra.gmra.mrb[2].mxu1 %vm528_vm5, %v527_v54 }
 0x10d   : > { %v522_v57 = vpop.f32.mrb[0].mxu1 }
 0x10e   : > { %v524_v58 = vpop.f32.mrb[1].mxu1 }
 0x1cd   : > { %v605_v59 = vpop.f32.mrb[2].mxu0 }
 0x1ce   : > { %v610_v60 = vmul.f32 %v605_v59, %v522_v57  ;;  %v607_v61 = vpop.f32.mrb[3].mxu0 }
 0x1cf   : > { %v611_v62 = vmul.f32 %v607_v61, %v524_v58  ;;  %v690_v63 = vpop.f32.mrb[2].mxu1 }
 0x1d0   : > { %612 = vst [vmem:[%s295_s15] sm:$0xff] %v610_v60  ;;  %v695_v0 = vmul.f32 %v690_v63, %v522_v57  ;;  %v692_v1 = vpop.f32.mrb[3].mxu1 }
 0x1d1   : > { %613 = vst [vmem:[%s295_s15 + $0x8] sm:$0xff] %v611_v62  ;;  %v696_v2 = vmul.f32 %v692_v1, %v524_v58 }
 0x1d2   : > { %697 = vst [vmem:[%s295_s15 + $0x10] sm:$0xff] %v695_v0 }
 0x1d3   : > { %698 = vst [vmem:[%s295_s15 + $0x18] sm:$0xff] %v696_v2 }
 0x1d4   : > { %921 = shalt.err (!%p918_p5)
}
 0x1d5   : > { %s922_s11 = scalar_lea.hbm %s1114_s20, 512  ;;  %s926_s14 = scalar_lea.hbm %s1168_s6, 1024 }
 0x1d6   : > { %p923_p6 = scmp.ne.s32.totalorder %s1114_s20, %s922_s11  ;;  %p927_p10 = scmp.lt.u32.totalorder %s1114_s20, %s1168_s6 }
 0x1d7   : > { %p928_p11 = scmp.lt.u32.totalorder %s926_s14, %s922_s11  ;;  %p930_p13 = scmp.lt.u32.totalorder %s922_s11, %s1114_s20 }
 0x1d8   : > { %p924_p7 = pnand %p923_p6, %p1068_p4 }
 0x1d9   : > { %p929_p12 = por %p928_p11, %p927_p10 }
 0x1da   : > { %p925_p9 = pneg %p924_p7 }
 0x1db   : > { %p931_p0 = por %p930_p13, %p929_p12 }
 0x1dd   : > { %p932_p1 = pnand %p931_p0, %p925_p9 }
 0x1df   : > { %935 = shalt.err (!%p932_p1)
}
 0x1e0   : > { %s991_s18 = smov 256   ;;  %s992_s19 = smov 16  }
 0x1e1   : > { %840 = dma.vmem_to_hbm [thread:$0]  (%p1068_p4), %s1109_s16, 512, %s1114_s20, %s1116_s24, %s991_s18, %s991_s18, %s992_s19  }
 0x1e2 PF: > { %p846_p2 = scmp.ge.s32.totalorder %s986_s26, 2  ;;  %s730_s27 = sand.u32 1, %s966_s21  }
 0x1e3   : > { %s731_s28 = scalar_lea.sflag [#allocation3], %s730_s27 }
 0x1e4   : > { %p843_p3 = pnand %p846_p2, %p1075_p8 }
 0x1e6   : > { %961 = dma.done.wait (!%p843_p3), %s731_s28, 512  }
 0x1e7   : > { %963 = vsyncadd (!%p843_p3), %s731_s28, 4294966784  ;;  %s19_s26 = sadd.s32 1, %s986_s26   ;;  %s1171_s21 = smov %s970_s22 }
 0x1e8   : > { %p16_p5 = scmp.ge.s32.totalorder %s19_s26, 4   ;;  %s1172_s22 = smov %s974_s23 }
 0x1e9   : > { %s1173_s23 = smov %s1081_s10  ;;  %s1174_s24 = smov %s982_s25 }
 0x1ea   : > { %s1175_s25 = smov %s1177_s29  ;;  %18 = sbr.rel (!%p16_p5) target bundleno = 4 (0x4), region = 82 }
 0x1f1   :  { %736 = vsyncpa [#allocation3], 1 }
 0x1f2   :  { %738 = vsyncpa [#allocation3 + $0x1], 1 }

</bundles_post_ra>
